<compile_context>
chip_gen: v6e
topology: v6e:2x2x1
jax: 0.10.0
libtpu: 0.0.40
codegen_flags: <defaults>
</compile_context>

<pallas_src>
import numpy as np
import jax
import jax.numpy as jnp
from jax import lax
from jax.experimental import pallas as pl
from jax.experimental.pallas import tpu as pltpu

# ---- CreateBase default hyper-parameters ----
IN_CHANS = 4
N_FILTERS_TIME = 40
N_FILTERS_SPAT = 40
FILTER_TIME_LEN = 25
POOL_TIME_LEN = 75
POOL_TIME_STRIDE = 15
BN_EPS = 1e-5
SAFE_LOG_EPS = 1e-6          # braindecode safe_log clamp

BATCH = 2
T_IN = 128                                                  # input time samples
T_CONV = T_IN - FILTER_TIME_LEN + 1                         # 104 after conv_time (valid)
P_OUT = (T_CONV - POOL_TIME_LEN) // POOL_TIME_STRIDE + 1    # 2 after avg-pool

K_RAW = IN_CHANS * FILTER_TIME_LEN                          # 100 fused contraction length
K_PAD = 128                                                 # lane-dense contraction dim
N_PAD = 128                                                 # lane-dense filter dim (real: 40)


def shallow_net_kernel(patches_ref, weff_ref, pool_ref, bns_ref, bnb_ref, o_ref):
    """Single grid step, whole batch fused.

    patches_ref : (B*T_CONV, K_PAD)   im2col patches, zero-padded on lanes
    weff_ref    : (K_PAD, N_PAD)      fused conv_time*conv_spat weights (zero-padded)
    pool_ref    : (POOL_ROWS, B*T_CONV) block-diagonal avg-pool matrix (1/75 per window)
    bns_ref     : (1, N_PAD)          folded BN scale
    bnb_ref     : (1, N_PAD)          folded BN shift (conv_time bias absorbed)
    o_ref       : (POOL_ROWS, N_PAD)  pooled + safe_log output (padding rows/cols sliced off outside)
    """
    # fused conv_time + conv_spat : one MXU matmul over the whole batch
    conv = jnp.dot(patches_ref[...], weff_ref[...],
                   preferred_element_type=jnp.float32)            # (B*T_CONV, N_PAD)

    # eval-mode batch-norm folded to affine (bias already absorbed), then square nonlin
    z = conv * bns_ref[...] + bnb_ref[...]
    z = z * z

    # AvgPool2d((75,1),(15,1)) as a block-diagonal pooling matmul (rides the MXU)
    pooled = jnp.dot(pool_ref[...], z, preferred_element_type=jnp.float32)  # (POOL_ROWS, N_PAD)

    # safe_log; TODO(synk): nn.Dropout(p=0.5) is identity in eval mode; training mask not implemented.
    o_ref[...] = jnp.log(jnp.maximum(pooled, SAFE_LOG_EPS))


@jax.jit
def shallow_net_forward(x_nchw, w1, b1, w2, bn_gamma, bn_beta, bn_mean, bn_var):
    """x_nchw: (B, in_chans, T, 1) PyTorch NCHW input. Returns (B, n_filters_spat, P_OUT, 1)."""
    B = x_nchw.shape[0]
    m_rows = B * T_CONV
    pool_rows = ((B * P_OUT + 7) // 8) * 8       # sublane-aligned output rows

    # _transpose_time_to_spat: (B, C, T, 1) -> (B, 1, T, C); drop singleton conv channel.
    x_tc = jnp.transpose(x_nchw[:, :, :, 0], (0, 2, 1)).astype(jnp.float32)   # (B, T, C)

    # im2col patches: patches[b, t, c*K + k] = x[b, t+k, c]   (tiny: ~B*104*100 floats)
    slabs = jnp.stack([x_tc[:, k:k + T_CONV, :] for k in range(FILTER_TIME_LEN)],
                      axis=-1)                                                # (B, T_CONV, C, K)
    patches = slabs.reshape(B, T_CONV, K_RAW).reshape(m_rows, K_RAW)
    patches_p = jnp.pad(patches, ((0, 0), (0, K_PAD - K_RAW)))                # (m_rows, 128)

    # fuse conv_time (K,1) and conv_spat (1,C) weights:
    #   W_eff[c*K+k, g] = sum_f w1[f,0,k,0] * w2[g,f,0,c]
    w1_fk = w1[:, 0, :, 0].astype(jnp.float32)                                # (F, K)
    w2_gfc = w2[:, :, 0, :].astype(jnp.float32)                               # (G, F, C)
    w_eff = jnp.einsum('fk,gfc->ckg', w1_fk, w2_gfc).reshape(K_RAW, N_FILTERS_SPAT)
    w_eff_p = jnp.pad(w_eff, ((0, K_PAD - K_RAW), (0, N_PAD - N_FILTERS_SPAT)))

    # fold eval-mode batch-norm AND the conv_time bias into a per-filter affine
    inv_std = bn_gamma / jnp.sqrt(bn_var + BN_EPS)
    bias_g = jnp.einsum('f,gfc->g', b1.astype(jnp.float32), w2_gfc)           # bias -> spat filters
    bn_scale = inv_std
    bn_shift = bn_beta - bn_mean * inv_std + bias_g * inv_std
    bn_scale_p = jnp.pad(bn_scale, (0, N_PAD - N_FILTERS_SPAT))[None, :]      # (1, 128)
    bn_shift_p = jnp.pad(bn_shift, (0, N_PAD - N_FILTERS_SPAT))[None, :]      # (1, 128)

    # block-diagonal average-pool matrix (host-side constant, folded at trace time)
    pm = np.zeros((pool_rows, m_rows), np.float32)
    for b in range(B):
        for p in range(P_OUT):
            s = b * T_CONV + p * POOL_TIME_STRIDE
            pm[b * P_OUT + p, s:s + POOL_TIME_LEN] = 1.0 / POOL_TIME_LEN
    pool_mat = jnp.asarray(pm)

    out = pl.pallas_call(
        shallow_net_kernel,
        out_shape=jax.ShapeDtypeStruct((pool_rows, N_PAD), jnp.float32),
        grid_spec=pl.GridSpec(
            grid=(1,),
            in_specs=[
                pl.BlockSpec((m_rows, K_PAD), lambda i: (0, 0)),
                pl.BlockSpec((K_PAD, N_PAD), lambda i: (0, 0)),
                pl.BlockSpec((pool_rows, m_rows), lambda i: (0, 0)),
                pl.BlockSpec((1, N_PAD), lambda i: (0, 0)),
                pl.BlockSpec((1, N_PAD), lambda i: (0, 0)),
            ],
            out_specs=pl.BlockSpec((pool_rows, N_PAD), lambda i: (0, 0)),
        ),
        compiler_params=pltpu.CompilerParams(dimension_semantics=("arbitrary",)),
    )(patches_p, w_eff_p, pool_mat, bn_scale_p, bn_shift_p)

    # strip padding, back to PyTorch NCHW: (B, G, P_OUT, 1)
    out = out[:B * P_OUT, :N_FILTERS_SPAT].reshape(B, P_OUT, N_FILTERS_SPAT)
    return jnp.transpose(out, (0, 2, 1))[..., None]


def reference_forward(x_nchw, w1, b1, w2, bn_gamma, bn_beta, bn_mean, bn_var):
    """Pure-JAX/XLA reference of the same eval-mode forward pass (highest precision)."""
    x = jnp.transpose(x_nchw, (0, 3, 2, 1))                                   # (B, 1, T, C)
    y = lax.conv_general_dilated(x, w1, (1, 1), "VALID",
                                 dimension_numbers=("NCHW", "OIHW", "NCHW"),
                                 precision=lax.Precision.HIGHEST)
    y = y + b1.reshape(1, -1, 1, 1)
    z = lax.conv_general_dilated(y, w2, (1, 1), "VALID",
                                 dimension_numbers=("NCHW", "OIHW", "NCHW"),
                                 precision=lax.Precision.HIGHEST)
    inv = (bn_gamma / jnp.sqrt(bn_var + BN_EPS)).reshape(1, -1, 1, 1)
    z = (z - bn_mean.reshape(1, -1, 1, 1)) * inv + bn_beta.reshape(1, -1, 1, 1)
    z = z * z
    p = lax.reduce_window(z, 0.0, lax.add,
                          (1, 1, POOL_TIME_LEN, 1), (1, 1, POOL_TIME_STRIDE, 1),
                          "VALID") / POOL_TIME_LEN
    return jnp.log(jnp.maximum(p, SAFE_LOG_EPS))


if __name__ == "__main__":
    key = jax.random.PRNGKey(0)
    kx, k1, k2 = jax.random.split(key, 3)

    # input: PyTorch NCHW (batch, in_chans, time, 1)
    x = jax.random.normal(kx, (BATCH, IN_CHANS, T_IN, 1), jnp.float32)

    # deterministic parameter init (xavier_uniform-like bounds, zero biases, unit BN)
    bound1 = (6.0 / (1 * FILTER_TIME_LEN + N_FILTERS_TIME * FILTER_TIME_LEN)) ** 0.5
    w1 = jax.random.uniform(k1, (N_FILTERS_TIME, 1, FILTER_TIME_LEN, 1),
                            jnp.float32, -bound1, bound1)
    b1 = jnp.zeros((N_FILTERS_TIME,), jnp.float32)          # init.constant_(bias, 0)

    bound2 = (6.0 / (N_FILTERS_TIME * IN_CHANS + N_FILTERS_SPAT * IN_CHANS)) ** 0.5
    w2 = jax.random.uniform(k2, (N_FILTERS_SPAT, N_FILTERS_TIME, 1, IN_CHANS),
                            jnp.float32, -bound2, bound2)   # no bias (batch_norm=True)

    bn_gamma = jnp.ones((N_FILTERS_SPAT,), jnp.float32)     # init.constant_(weight, 1)
    bn_beta = jnp.zeros((N_FILTERS_SPAT,), jnp.float32)     # init.constant_(bias, 0)
    bn_mean = jnp.zeros((N_FILTERS_SPAT,), jnp.float32)     # running stats (eval mode)
    bn_var = jnp.ones((N_FILTERS_SPAT,), jnp.float32)

    out = shallow_net_forward(x, w1, b1, w2, bn_gamma, bn_beta, bn_mean, bn_var)
    out = jax.block_until_ready(out)

    ref = reference_forward(x, w1, b1, w2, bn_gamma, bn_beta, bn_mean, bn_var)
    assert out.shape == (BATCH, N_FILTERS_SPAT, P_OUT, 1), out.shape
    assert jnp.allclose(out, ref, atol=5e-3, rtol=5e-3), float(jnp.max(jnp.abs(out - ref)))

    print("KERNEL_OK")
</pallas_src>

<mosaic_0001>
module attributes {stable_mosaic.version = 11 : i64} {
  func.func @shallow_net_kernel(%arg0: i32, %arg1: memref<208x128xf32, #tpu.memory_space<vmem>>, %arg2: memref<128x128xf32, #tpu.memory_space<vmem>>, %arg3: memref<8x208xf32, #tpu.memory_space<vmem>>, %arg4: memref<1x128xf32, #tpu.memory_space<vmem>>, %arg5: memref<1x128xf32, #tpu.memory_space<vmem>>, %arg6: memref<8x128xf32, #tpu.memory_space<vmem>>) attributes {dimension_semantics = [#tpu.dimension_semantics<arbitrary>], iteration_bounds = array<i64: 1>, scalar_prefetch = 0 : i64, scratch_operands = 0 : i64, tpu.core_type = #tpu.core_type<tc>, window_params = [{pipeline_mode = #tpu.pipeline_mode<synchronous>, transform_indices = @transform_0, window_bounds = array<i64: 208, 128>}, {pipeline_mode = #tpu.pipeline_mode<synchronous>, transform_indices = @transform_1, window_bounds = array<i64: 128, 128>}, {pipeline_mode = #tpu.pipeline_mode<synchronous>, transform_indices = @transform_2, window_bounds = array<i64: 8, 208>}, {pipeline_mode = #tpu.pipeline_mode<synchronous>, transform_indices = @transform_3, window_bounds = array<i64: 1, 128>}, {pipeline_mode = #tpu.pipeline_mode<synchronous>, transform_indices = @transform_4, window_bounds = array<i64: 1, 128>}, {pipeline_mode = #tpu.pipeline_mode<synchronous>, transform_indices = @transform_5, window_bounds = array<i64: 8, 128>}]} {
    %c0 = arith.constant 0 : index
    %c0_0 = arith.constant 0 : index
    %0 = vector.load %arg1[%c0, %c0_0] : memref<208x128xf32, #tpu.memory_space<vmem>>, vector<208x128xf32>
    %c0_1 = arith.constant 0 : index
    %c0_2 = arith.constant 0 : index
    %1 = vector.load %arg2[%c0_1, %c0_2] : memref<128x128xf32, #tpu.memory_space<vmem>>, vector<128x128xf32>
    %cst = arith.constant dense<0.000000e+00> : vector<208x128xf32>
    %2 = tpu.matmul %0, %1, %cst {dimension_numbers = #tpu.dot_dimension_numbers<[1], [0], [0], [1], [0, 0, 1, 1], [], []>} : vector<208x128xf32>, vector<128x128xf32>, vector<208x128xf32> -> vector<208x128xf32>
    %c0_3 = arith.constant 0 : index
    %c0_4 = arith.constant 0 : index
    %3 = vector.load %arg4[%c0_3, %c0_4] : memref<1x128xf32, #tpu.memory_space<vmem>>, vector<1x128xf32>
    %4 = vector.broadcast %3 : vector<1x128xf32> to vector<208x128xf32>
    %5 = arith.mulf %2, %4 : vector<208x128xf32>
    %c0_5 = arith.constant 0 : index
    %c0_6 = arith.constant 0 : index
    %6 = vector.load %arg5[%c0_5, %c0_6] : memref<1x128xf32, #tpu.memory_space<vmem>>, vector<1x128xf32>
    %7 = vector.broadcast %6 : vector<1x128xf32> to vector<208x128xf32>
    %8 = arith.addf %5, %7 : vector<208x128xf32>
    %9 = arith.mulf %8, %8 : vector<208x128xf32>
    %c0_7 = arith.constant 0 : index
    %c0_8 = arith.constant 0 : index
    %10 = vector.load %arg3[%c0_7, %c0_8] : memref<8x208xf32, #tpu.memory_space<vmem>>, vector<8x208xf32>
    %cst_9 = arith.constant dense<0.000000e+00> : vector<8x128xf32>
    %11 = tpu.matmul %10, %9, %cst_9 {dimension_numbers = #tpu.dot_dimension_numbers<[1], [0], [0], [1], [0, 0, 1, 1], [], []>} : vector<8x208xf32>, vector<208x128xf32>, vector<8x128xf32> -> vector<8x128xf32>
    %cst_10 = arith.constant 9.99999997E-7 : f32
    %12 = vector.broadcast %cst_10 : f32 to vector<8x128xf32>
    %13 = arith.maximumf %11, %12 : vector<8x128xf32>
    %14 = math.log %13 : vector<8x128xf32>
    %c0_11 = arith.constant 0 : index
    %c0_12 = arith.constant 0 : index
    %15 = vector.load %arg6[%c0_11, %c0_12] : memref<8x128xf32, #tpu.memory_space<vmem>>, vector<8x128xf32>
    tpu.vector_store %arg6[%c0_11, %c0_12], %14 {strides = array<i32>} : memref<8x128xf32, #tpu.memory_space<vmem>>, vector<8x128xf32>,
    return
  }
  func.func @transform_0(%arg0: i32) -> (i32, i32) {
    %c0_i32 = arith.constant 0 : i32
    %c0_i32_0 = arith.constant 0 : i32
    %c0_i32_1 = arith.constant 0 : i32
    return %c0_i32, %c0_i32_0 : i32, i32
  }
  func.func @transform_1(%arg0: i32) -> (i32, i32) {
    %c0_i32 = arith.constant 0 : i32
    %c0_i32_0 = arith.constant 0 : i32
    %c0_i32_1 = arith.constant 0 : i32
    return %c0_i32, %c0_i32_0 : i32, i32
  }
  func.func @transform_2(%arg0: i32) -> (i32, i32) {
    %c0_i32 = arith.constant 0 : i32
    %c0_i32_0 = arith.constant 0 : i32
    %c0_i32_1 = arith.constant 0 : i32
    return %c0_i32, %c0_i32_0 : i32, i32
  }
  func.func @transform_3(%arg0: i32) -> (i32, i32) {
    %c0_i32 = arith.constant 0 : i32
    %c0_i32_0 = arith.constant 0 : i32
    %c0_i32_1 = arith.constant 0 : i32
    return %c0_i32, %c0_i32_0 : i32, i32
  }
  func.func @transform_4(%arg0: i32) -> (i32, i32) {
    %c0_i32 = arith.constant 0 : i32
    %c0_i32_0 = arith.constant 0 : i32
    %c0_i32_1 = arith.constant 0 : i32
    return %c0_i32, %c0_i32_0 : i32, i32
  }
  func.func @transform_5(%arg0: i32) -> (i32, i32) {
    %c0_i32 = arith.constant 0 : i32
    %c0_i32_0 = arith.constant 0 : i32
    %c0_i32_1 = arith.constant 0 : i32
    return %c0_i32, %c0_i32_0 : i32, i32
  }
}

</mosaic_0001>

<bundles_post_ra>
// kernel: shallow_net_forward.1
= control target key start
LH: loop header
LB: loop body
LE: loop exit
PB: predicated region body
PF: predicated region fallthrough
CT: control target
= control target key end

     0   :  { %v552_v42 = vmov 0.0   ;;  %vm351_vm0 = vcmask 654336   ;;  %s836_s1 = inlined_call_operand.vmem [shape: f32[128,128], index: 1, kind: input, shape index: {}]   ;;  %s837_s0 = inlined_call_operand.vmem [shape: f32[208,128], index: 0, kind: input, shape index: {}]   ;;  %s838_s2 = inlined_call_operand.vmem [shape: f32[8,208], index: 2, kind: input, shape index: {}]   ;;  %s839_s3 = inlined_call_operand.vmem [shape: f32[1,128], index: 3, kind: input, shape index: {}]   ;;  %s840_s4 = inlined_call_operand.vmem [shape: f32[1,128], index: 4, kind: input, shape index: {}]   ;;  %s841_s5 = inlined_call_operand.vmem [shape: f32[8,128], index: 5, kind: output, shape index: {}]  }
   0x1   :  { %v61_v0 = vld [vmem:[%s836_s1 + $0x78] sm:$0xff]  ;;  %v60_v1 = vld [vmem:[%s836_s1 + $0x70] sm:$0xff]  ;;  %v59_v2 = vld [vmem:[%s836_s1 + $0x68] sm:$0xff]  ;;  %355 = vmatprep.subr.mxu1 %v552_v42 }
   0x2   :  { %478 = vmatprep.subr.mxu0 %v61_v0  ;;  %v58_v3 = vld [vmem:[%s836_s1 + $0x60] sm:$0xff]  ;;  %v57_v5 = vld [vmem:[%s836_s1 + $0x58] sm:$0xff]  ;;  %v56_v6 = vld [vmem:[%s836_s1 + $0x50] sm:$0xff] }
   0x3   :  { %479 = vmatpush3.msra.mxu0 %v61_v0  ;;  %v20_v4 = vld [vmem:[%s837_s0] sm:$0xff]  ;;  %v55_v7 = vld [vmem:[%s836_s1 + $0x48] sm:$0xff]  ;;  %v53_v9 = vld [vmem:[%s836_s1 + $0x38] sm:$0xff] }
   0x4   :  { %480 = vmatprep.subr.mxu0 %v60_v1  ;;  %510 = vmatprep.mubr.f32.mxu0 %v20_v4  ;;  %v54_v8 = vld [vmem:[%s836_s1 + $0x40] sm:$0xff]  ;;  %v52_v10 = vld [vmem:[%s836_s1 + $0x30] sm:$0xff]  ;;  %v51_v11 = vld [vmem:[%s836_s1 + $0x28] sm:$0xff] }
   0x5   :  { %481 = vmatpush3.msra.mxu0 %v60_v1  ;;  %v50_v12 = vld [vmem:[%s836_s1 + $0x20] sm:$0xff]  ;;  %v49_v13 = vld [vmem:[%s836_s1 + $0x18] sm:$0xff]  ;;  %v48_v14 = vld [vmem:[%s836_s1 + $0x10] sm:$0xff] }
   0x6   :  { %482 = vmatprep.subr.mxu0 %v59_v2  ;;  %v47_v15 = vld [vmem:[%s836_s1 + $0x8] sm:$0xff]  ;;  %v46_v16 = vld [vmem:[%s836_s1] sm:$0xff]  ;;  %v22_v18 = vld [vmem:[%s837_s0 + $0x10] sm:$0xff] }
   0x7   :  { %483 = vmatpush3.msra.mxu0 %v59_v2  ;;  %v21_v17 = vld [vmem:[%s837_s0 + $0x8] sm:$0xff]  ;;  %v23_v19 = vld [vmem:[%s837_s0 + $0x18] sm:$0xff]  ;;  %v24_v20 = vld [vmem:[%s837_s0 + $0x20] sm:$0xff] }
   0x8   :  { %484 = vmatprep.subr.mxu0 %v58_v3  ;;  %v25_v21 = vld [vmem:[%s837_s0 + $0x28] sm:$0xff]  ;;  %v26_v22 = vld [vmem:[%s837_s0 + $0x30] sm:$0xff]  ;;  %v27_v23 = vld [vmem:[%s837_s0 + $0x38] sm:$0xff] }
   0x9   :  { %485 = vmatpush3.msra.mxu0 %v58_v3  ;;  %v28_v24 = vld [vmem:[%s837_s0 + $0x40] sm:$0xff]  ;;  %v29_v25 = vld [vmem:[%s837_s0 + $0x48] sm:$0xff]  ;;  %v30_v26 = vld [vmem:[%s837_s0 + $0x50] sm:$0xff] }
   0xa   :  { %486 = vmatprep.subr.mxu0 %v57_v5  ;;  %v31_v27 = vld [vmem:[%s837_s0 + $0x58] sm:$0xff]  ;;  %v32_v28 = vld [vmem:[%s837_s0 + $0x60] sm:$0xff]  ;;  %v33_v29 = vld [vmem:[%s837_s0 + $0x68] sm:$0xff] }
   0xb   :  { %487 = vmatpush3.msra.mxu0 %v57_v5  ;;  %v34_v30 = vld [vmem:[%s837_s0 + $0x70] sm:$0xff]  ;;  %v35_v31 = vld [vmem:[%s837_s0 + $0x78] sm:$0xff]  ;;  %v36_v32 = vld [vmem:[%s837_s0 + $0x80] sm:$0xff] }
   0xc   :  { %488 = vmatprep.subr.mxu0 %v56_v6  ;;  %v37_v33 = vld [vmem:[%s837_s0 + $0x88] sm:$0xff]  ;;  %v38_v34 = vld [vmem:[%s837_s0 + $0x90] sm:$0xff]  ;;  %v39_v35 = vld [vmem:[%s837_s0 + $0x98] sm:$0xff] }
   0xd   :  { %489 = vmatpush3.msra.mxu0 %v56_v6  ;;  %v40_v36 = vld [vmem:[%s837_s0 + $0xa0] sm:$0xff]  ;;  %v41_v37 = vld [vmem:[%s837_s0 + $0xa8] sm:$0xff]  ;;  %v42_v38 = vld [vmem:[%s837_s0 + $0xb0] sm:$0xff] }
   0xe   :  { %490 = vmatprep.subr.mxu0 %v55_v7  ;;  %v43_v39 = vld [vmem:[%s837_s0 + $0xb8] sm:$0xff]  ;;  %v44_v40 = vld [vmem:[%s837_s0 + $0xc0] sm:$0xff]  ;;  %v45_v41 = vld [vmem:[%s837_s0 + $0xc8] sm:$0xff] }
   0xf   :  { %491 = vmatpush3.msra.mxu0 %v55_v7  ;;  %v350_v43 = vld [vmem:[%s838_s2 + $0x8] sm:$0xff]  ;;  %v724_v58 = vld [vmem:[%s839_s3] ss:$0 sm:$0xff] }
  0x10   :  { %492 = vmatprep.subr.mxu0 %v54_v8  ;;  %435 = vmatprep.mubr.msk.f32.mxu1 %vm351_vm0, %v350_v43  ;;  %v731_v62 = vld [vmem:[%s840_s4] ss:$0 sm:$0xff] }
  0x11   :  { %493 = vmatpush3.msra.mxu0 %v54_v8 }
  0x12   :  { %494 = vmatprep.subr.mxu0 %v53_v9 }
  0x13   :  { %495 = vmatpush3.msra.mxu0 %v53_v9 }
  0x14   :  { %496 = vmatprep.subr.mxu0 %v52_v10 }
  0x15   :  { %497 = vmatpush3.msra.mxu0 %v52_v10 }
  0x16   :  { %498 = vmatprep.subr.mxu0 %v51_v11 }
  0x17   :  { %499 = vmatpush3.msra.mxu0 %v51_v11 }
  0x18   :  { %500 = vmatprep.subr.mxu0 %v50_v12 }
  0x19   :  { %501 = vmatpush3.msra.mxu0 %v50_v12 }
  0x1a   :  { %502 = vmatprep.subr.mxu0 %v49_v13 }
  0x1b   :  { %503 = vmatpush3.msra.mxu0 %v49_v13 }
  0x1c   :  { %504 = vmatprep.subr.mxu0 %v48_v14 }
  0x1d   :  { %505 = vmatpush3.msra.mxu0 %v48_v14 }
  0x1e   :  { %506 = vmatprep.subr.mxu0 %v47_v15 }
  0x1f   :  { %507 = vmatpush3.msra.mxu0 %v47_v15 }
  0x20   :  { %508 = vmatprep.subr.mxu0 %v46_v16 }
  0x21   :  { %509 = vmatpush3.msra.mxu0 %v46_v16 }
  0x22   :  { %511 = vmatmul.mubr.f32.vlgmr.msra.gmra.mxu0 %v21_v17 }
  0x23   :  { %513 = vmatprep.mubr.f32.mxu0 %v22_v18 }
  0x26   :  { %514 = vmatmul.mubr.f32.gmra.mxu0 %v23_v19 }
  0x27   :  { %516 = vmatprep.mubr.f32.mxu0 %v24_v20 }
  0x2a   :  { %517 = vmatmul.mubr.f32.gmra.mxu0 %v25_v21 }
  0x2b   :  { %519 = vmatprep.mubr.f32.mxu0 %v26_v22 }
  0x2e   :  { %520 = vmatmul.mubr.f32.gmra.mxu0 %v27_v23 }
  0x2f   :  { %522 = vmatprep.mubr.f32.mxu0 %v28_v24 }
  0x32   :  { %523 = vmatmul.mubr.f32.gmra.mxu0 %v29_v25 }
  0x33   :  { %525 = vmatprep.mubr.f32.mxu0 %v30_v26 }
  0x36   :  { %526 = vmatmul.mubr.f32.gmra.mxu0 %v31_v27 }
  0x37   :  { %528 = vmatprep.mubr.f32.mxu0 %v32_v28 }
  0x3a   :  { %529 = vmatmul.mubr.f32.gmra.mxu0 %v33_v29 }
  0x3b   :  { %531 = vmatprep.mubr.f32.mxu0 %v34_v30 }
  0x3e   :  { %532 = vmatmul.mubr.f32.gmra.mxu0 %v35_v31 }
  0x3f   :  { %534 = vmatprep.mubr.f32.mxu0 %v36_v32 }
  0x42   :  { %535 = vmatmul.mubr.f32.gmra.mxu0 %v37_v33 }
  0x43   :  { %537 = vmatprep.mubr.f32.mxu0 %v38_v34 }
  0x46   :  { %538 = vmatmul.mubr.f32.gmra.mxu0 %v39_v35 }
  0x47   :  { %540 = vmatprep.mubr.f32.mxu0 %v40_v36 }
  0x4a   :  { %541 = vmatmul.mubr.f32.gmra.mxu0 %v41_v37 }
  0x4b   :  { %543 = vmatprep.mubr.f32.mxu0 %v42_v38 }
  0x4e   :  { %544 = vmatmul.mubr.f32.gmra.mxu0 %v43_v39 }
  0x4f   :  { %546 = vmatprep.mubr.f32.mxu0 %v44_v40 }
  0x52   :  { %547 = vmatmul.mubr.f32.gmra.mxu0 %v45_v41 }
  0xe2   :  { %v713_v44 = vpop.f32.mrf.mxu0 }
  0xe4   :  { %v715_v45 = vpop.f32.mrf.mxu0 }
  0xe6   :  { %v717_v46 = vpop.f32.mrf.mxu0 }
  0xe7   :  { %v267_v36 = vmul.f32 %v717_v46, %v724_v58 }
  0xe8   :  { %v719_v47 = vpop.f32.mrf.mxu0 }
  0xe9   :  { %v266_v39 = vmul.f32 %v724_v58, %v719_v47  ;;  %v300_v46 = vadd.f32 %v731_v62, %v267_v36 }
  0xea   :  { %v518_v48 = vpop.f32.mrf.mxu0 }
  0xeb   :  { %v269_v29 = vmul.f32 %v518_v48, %v724_v58  ;;  %v265_v48 = vmul.f32 %v713_v44, %v724_v58  ;;  %v299_v47 = vadd.f32 %v731_v62, %v266_v39 }
  0xec   :  { %v148_v49 = vpop.f32.mrf.mxu0 }
  0xed   :  { %v268_v32 = vmul.f32 %v724_v58, %v148_v49  ;;  %v302_v37 = vadd.f32 %v731_v62, %v269_v29  ;;  %v298_v44 = vadd.f32 %v731_v62, %v265_v48 }
  0xee   :  { %v521_v50 = vpop.f32.mrf.mxu0 }
  0xef   :  { %v271_v21 = vmul.f32 %v521_v50, %v724_v58  ;;  %v301_v40 = vadd.f32 %v731_v62, %v268_v32  ;;  %v328_v49 = vmul.f32 %v302_v37, %v302_v37  ;;  %v264_v50 = vmul.f32 %v724_v58, %v715_v45 }
  0xf0   :  { %v158_v51 = vpop.f32.mrf.mxu0 }
  0xf1   :  { %v270_v25 = vmul.f32 %v724_v58, %v158_v51  ;;  %v304_v30 = vadd.f32 %v731_v62, %v271_v21  ;;  %v327_v51 = vmul.f32 %v301_v40, %v301_v40 }
  0xf2   :  { %v524_v52 = vpop.f32.mrf.mxu0 }
  0xf3   :  { %v273_v13 = vmul.f32 %v524_v52, %v724_v58  ;;  %v303_v33 = vadd.f32 %v731_v62, %v270_v25  ;;  %v330_v38 = vmul.f32 %v304_v30, %v304_v30 }
  0xf4   :  { %v168_v53 = vpop.f32.mrf.mxu0 }
  0xf5   :  { %v272_v17 = vmul.f32 %v724_v58, %v168_v53  ;;  %v306_v22 = vadd.f32 %v731_v62, %v273_v13  ;;  %v329_v41 = vmul.f32 %v303_v33, %v303_v33 }
  0xf6   :  { %v527_v54 = vpop.f32.mrf.mxu0 }
  0xf7   :  { %v275_v4 = vmul.f32 %v527_v54, %v724_v58  ;;  %v305_v26 = vadd.f32 %v731_v62, %v272_v17  ;;  %v332_v31 = vmul.f32 %v306_v22, %v306_v22  ;;  %v326_v54 = vmul.f32 %v300_v46, %v300_v46 }
  0xf8   :  { %v178_v55 = vpop.f32.mrf.mxu0 }
  0xf9   :  { %v274_v9 = vmul.f32 %v724_v58, %v178_v55  ;;  %v308_v14 = vadd.f32 %v731_v62, %v275_v4  ;;  %v331_v34 = vmul.f32 %v305_v26, %v305_v26  ;;  %v297_v55 = vadd.f32 %v731_v62, %v264_v50 }
  0xfa   :  { %v530_v56 = vpop.f32.mrf.mxu0 }
  0xfb   :  { %v277_v60 = vmul.f32 %v530_v56, %v724_v58  ;;  %v307_v18 = vadd.f32 %v731_v62, %v274_v9  ;;  %v334_v23 = vmul.f32 %v308_v14, %v308_v14  ;;  %v325_v56 = vmul.f32 %v299_v47, %v299_v47 }
  0xfc   :  { %v188_v57 = vpop.f32.mrf.mxu0 }
  0xfd   :  { %v276_v0 = vmul.f32 %v724_v58, %v188_v57  ;;  %v310_v5 = vadd.f32 %v731_v62, %v277_v60  ;;  %v333_v27 = vmul.f32 %v307_v18, %v307_v18 }
  0xfe   :  { %v533_v59 = vpop.f32.mrf.mxu0 }
  0xff   :  { %v279_v61 = vmul.f32 %v533_v59, %v724_v58  ;;  %v309_v10 = vadd.f32 %v731_v62, %v276_v0  ;;  %v336_v15 = vmul.f32 %v310_v5, %v310_v5  ;;  %v324_v59 = vmul.f32 %v298_v44, %v298_v44 }
 0x100   :  { %v198_v63 = vpop.f32.mrf.mxu0 }
 0x101   :  { %v278_v1 = vmul.f32 %v724_v58, %v198_v63  ;;  %v312_v2 = vadd.f32 %v731_v62, %v279_v61  ;;  %v335_v19 = vmul.f32 %v309_v10, %v309_v10  ;;  %v323_v61 = vmul.f32 %v297_v55, %v297_v55 }
 0x102   :  { %v736_v3 = vpop.f32.mrf.mxu0 }
 0x103   :  { %v311_v6 = vadd.f32 %v731_v62, %v278_v1  ;;  %v338_v7 = vmul.f32 %v312_v2, %v312_v2  ;;  %v281_v17 = vmul.f32 %v736_v3, %v724_v58 }
 0x104   :  { %v741_v8 = vpop.f32.mrf.mxu0 }
 0x105   :  { %v337_v11 = vmul.f32 %v311_v6, %v311_v6  ;;  %356 = vmatpush1.msra.mxu1 %v338_v7  ;;  %v314_v21 = vadd.f32 %v731_v62, %v281_v17 }
 0x106   :  { %357 = vmatprep.subr.mxu1 %v552_v42  ;;  %v746_v12 = vpop.f32.mrf.mxu0 }
 0x107   :  { %358 = vmatpush1.msra.mxu1 %v337_v11  ;;  %v283_v9 = vmul.f32 %v746_v12, %v724_v58 }
 0x108   :  { %359 = vmatprep.subr.mxu1 %v552_v42  ;;  %v751_v16 = vpop.f32.mrf.mxu0 }
 0x109   :  { %360 = vmatpush1.msra.mxu1 %v336_v15  ;;  %v282_v13 = vmul.f32 %v724_v58, %v751_v16  ;;  %v316_v12 = vadd.f32 %v731_v62, %v283_v9 }
 0x10a   :  { %361 = vmatprep.subr.mxu1 %v552_v42  ;;  %v756_v20 = vpop.f32.mrf.mxu0 }
 0x10b   :  { %362 = vmatpush1.msra.mxu1 %v335_v19  ;;  %v285_v2 = vmul.f32 %v756_v20, %v724_v58  ;;  %v280_v19 = vmul.f32 %v724_v58, %v741_v8  ;;  %v315_v16 = vadd.f32 %v731_v62, %v282_v13  ;;  %v342_v22 = vmul.f32 %v316_v12, %v316_v12  ;;  %v349_v8 = vld [vmem:[%s838_s2] sm:$0xff] }
 0x10c   :  { %363 = vmatprep.subr.mxu1 %v552_v42  ;;  %v761_v24 = vpop.f32.mrf.mxu0 }
 0x10d   :  { %364 = vmatpush1.msra.mxu1 %v334_v23  ;;  %v284_v5 = vmul.f32 %v724_v58, %v761_v24  ;;  %v318_v10 = vadd.f32 %v731_v62, %v285_v2  ;;  %v313_v3 = vadd.f32 %v731_v62, %v280_v19  ;;  %v341_v23 = vmul.f32 %v315_v16, %v315_v16 }
 0x10e   :  { %365 = vmatprep.subr.mxu1 %v552_v42  ;;  %v545_v28 = vpop.f32.mrf.mxu0  ;;  %v340_v24 = vmul.f32 %v314_v21, %v314_v21 }
 0x10f   :  { %366 = vmatpush1.msra.mxu1 %v333_v27  ;;  %v287_v60 = vmul.f32 %v545_v28, %v724_v58  ;;  %v317_v14 = vadd.f32 %v731_v62, %v284_v5  ;;  %v344_v18 = vmul.f32 %v318_v10, %v318_v10 }
 0x110   :  { %367 = vmatprep.subr.mxu1 %v552_v42  ;;  %v238_v35 = vpop.f32.mrf.mxu0 }
 0x111   :  { %368 = vmatpush1.msra.mxu1 %v332_v31  ;;  %v286_v63 = vmul.f32 %v724_v58, %v238_v35  ;;  %v320_v4 = vadd.f32 %v731_v62, %v287_v60  ;;  %v343_v20 = vmul.f32 %v317_v14, %v317_v14 }
 0x112   :  { %369 = vmatprep.subr.mxu1 %v552_v42  ;;  %v548_v43 = vpop.f32.mrf.mxu0 }
 0x113   :  { %370 = vmatpush1.msra.mxu1 %v331_v34  ;;  %v289_v52 = vmul.f32 %v548_v43, %v724_v58  ;;  %v319_v6 = vadd.f32 %v731_v62, %v286_v63  ;;  %v346_v11 = vmul.f32 %v320_v4, %v320_v4 }
 0x114   :  { %371 = vmatprep.subr.mxu1 %v552_v42  ;;  %v248_v53 = vpop.f32.mrf.mxu0 }
 0x115   :  { %372 = vmatpush1.msra.mxu1 %v330_v38  ;;  %v322_v45 = vadd.f32 %v731_v62, %v289_v52  ;;  %v288_v57 = vmul.f32 %v724_v58, %v248_v53  ;;  %v345_v15 = vmul.f32 %v319_v6, %v319_v6  ;;  %v339_v58 = vmul.f32 %v313_v3, %v313_v3 }
 0x116   :  { %373 = vmatprep.subr.mxu1 %v552_v42 }
 0x117   :  { %374 = vmatpush1.msra.mxu1 %v329_v41  ;;  %v348_v0 = vmul.f32 %v322_v45, %v322_v45  ;;  %v321_v1 = vadd.f32 %v731_v62, %v288_v57 }
 0x118   :  { %375 = vmatprep.subr.mxu1 %v552_v42 }
 0x119   :  { %376 = vmatpush1.msra.mxu1 %v328_v49  ;;  %v347_v7 = vmul.f32 %v321_v1, %v321_v1 }
 0x11a   :  { %377 = vmatprep.subr.mxu1 %v552_v42 }
 0x11b   :  { %378 = vmatpush1.msra.mxu1 %v327_v51 }
 0x11c   :  { %379 = vmatprep.subr.mxu1 %v552_v42 }
 0x11d   :  { %380 = vmatpush1.msra.mxu1 %v326_v54 }
 0x11e   :  { %381 = vmatprep.subr.mxu1 %v552_v42 }
 0x11f   :  { %382 = vmatpush1.msra.mxu1 %v325_v56 }
 0x120   :  { %383 = vmatprep.subr.mxu1 %v552_v42 }
 0x121   :  { %384 = vmatpush1.msra.mxu1 %v324_v59 }
 0x122   :  { %385 = vmatprep.subr.mxu1 %v552_v42 }
 0x123   :  { %386 = vmatpush1.msra.mxu1 %v323_v61 }
 0x124   :  { %399 = vmatprep.subr.mxu1 %v552_v42 }
 0x125   :  { %400 = vmatpush2.msra.mxu1 %v348_v0 }
 0x126   :  { %401 = vmatprep.subr.mxu1 %v552_v42 }
 0x127   :  { %402 = vmatpush2.msra.mxu1 %v347_v7 }
 0x128   :  { %403 = vmatprep.subr.mxu1 %v552_v42 }
 0x129   :  { %404 = vmatpush2.msra.mxu1 %v346_v11 }
 0x12a   :  { %405 = vmatprep.subr.mxu1 %v552_v42 }
 0x12b   :  { %406 = vmatpush2.msra.mxu1 %v345_v15 }
 0x12c   :  { %407 = vmatprep.subr.mxu1 %v552_v42 }
 0x12d   :  { %408 = vmatpush2.msra.mxu1 %v344_v18 }
 0x12e   :  { %409 = vmatprep.subr.mxu1 %v552_v42 }
 0x12f   :  { %410 = vmatpush2.msra.mxu1 %v343_v20 }
 0x130   :  { %411 = vmatprep.subr.mxu1 %v552_v42 }
 0x131   :  { %412 = vmatpush2.msra.mxu1 %v342_v22 }
 0x132   :  { %413 = vmatprep.subr.mxu1 %v552_v42 }
 0x133   :  { %414 = vmatpush2.msra.mxu1 %v341_v23 }
 0x134   :  { %415 = vmatprep.subr.mxu1 %v552_v42 }
 0x135   :  { %416 = vmatpush2.msra.mxu1 %v340_v24 }
 0x136   :  { %417 = vmatprep.subr.mxu1 %v552_v42 }
 0x137   :  { %418 = vmatpush2.msra.mxu1 %v339_v58 }
 0x138   :  { %420 = vmatmul.mubr.f32.vlgmr.msra.gmra.mxu1 %v349_v8 }
 0x1f8   :  { %v421_v25 = vpop.f32.mrf.mxu1 }
 0x1f9   :  { %v425_v62 = vmax.f32 %v421_v25, 1e-06 }
 0x1fa   :  { %v423_v26 = vpop.f32.mrf.mxu1 }
 0x1fb   :  { %550 = vlog2.f32 %v425_v62 }
 0x208   :  { %v551_v27 = vpop.eup %550 }
 0x209   :  { %v427_v28 = vmul.f32 0.6931472, %v551_v27 }
 0x20b   :  { %428 = vst [vmem:[%s841_s5] sm:$0xff] %v427_v28 }

</bundles_post_ra>
